<compile_context>
chip_gen: v5e
topology: v5e:2x2
jax: 0.10.0
libtpu: 0.0.40
codegen_flags: <defaults>
</compile_context>

<pallas_src>
import jax
import jax.numpy as jnp
from jax.experimental import pallas as pl
from jax.experimental.pallas import tpu as pltpu


# ----------------------------------------------------------------------------
# Kernel: one batch tile (TB columns) per grid step, feature-major layout.
# ----------------------------------------------------------------------------
def mlp_kernel(eu_ref, ei_ref,
               w1u_ref, w1i_ref, b1_ref,
               w2_ref, b2_ref,
               w3_ref, b3_ref,
               wp_ref, bp_ref,
               out_ref):
    # First layer: split-W1 replaces the lane-axis concat.
    # (32,32)bf16 @ (32,TB)bf16 -> f32 accumulate
    h = jnp.dot(w1u_ref[...], eu_ref[...], preferred_element_type=jnp.float32)
    h = h + jnp.dot(w1i_ref[...], ei_ref[...], preferred_element_type=jnp.float32)
    h = jnp.maximum(h + b1_ref[...], 0.0)                               # (32, TB)

    h = jnp.dot(w2_ref[...], h, preferred_element_type=jnp.float32)
    h = jnp.maximum(h + b2_ref[...], 0.0)                               # (16, TB)

    h = jnp.dot(w3_ref[...], h, preferred_element_type=jnp.float32)
    h = jnp.maximum(h + b3_ref[...], 0.0)                               # (8, TB)

    # Predict layer (N=1): VPU multiply + sublane reduce (keeps MXU free,
    # result is already lane-dense).
    logit = jnp.sum(h * wp_ref[...], axis=0, keepdims=True) + bp_ref[...]  # (1, TB)
    out_ref[...] = jax.nn.sigmoid(logit)


# ----------------------------------------------------------------------------
# Wrapper: tiling, padding, specs.
# ----------------------------------------------------------------------------
def mlp_forward(embed_user_t, embed_item_t, params, *, tb=1024):
    """embed_*_t are feature-major: (emb_dim, B)."""
    emb_dim, B = embed_user_t.shape
    num_tiles = pl.cdiv(B, tb)
    b_pad = num_tiles * tb
    if b_pad != B:  # pad batch to a tile multiple; padded columns are dropped later
        pad = ((0, 0), (0, b_pad - B))
        embed_user_t = jnp.pad(embed_user_t, pad)
        embed_item_t = jnp.pad(embed_item_t, pad)

    # bf16 MXU operands (halves embedding HBM read); accumulation stays f32.
    eu = embed_user_t.astype(jnp.bfloat16)
    ei = embed_item_t.astype(jnp.bfloat16)
    w1u = params["w1"][:, :emb_dim].astype(jnp.bfloat16)
    w1i = params["w1"][:, emb_dim:].astype(jnp.bfloat16)

    args = (eu, ei, w1u, w1i, params["b1"],
            params["w2"], params["b2"],
            params["w3"], params["b3"],
            params["wp"], params["bp"])

    def stream_spec():
        # per-tile streamed input: (emb_dim, TB) block, tiled along batch (lanes)
        return pl.BlockSpec((emb_dim, tb), lambda i: (0, i))

    def resident_spec(arr):
        # full array, constant block index -> stays VMEM-resident, not re-DMA'd
        return pl.BlockSpec(arr.shape, lambda i: (0, 0))

    in_specs = [stream_spec(), stream_spec()] + [resident_spec(a) for a in args[2:]]

    flops = 2 * b_pad * (64 * 32 + 32 * 16 + 16 * 8 + 8)
    bytes_accessed = (2 * b_pad * emb_dim * 2          # bf16 embedding tiles in
                      + b_pad * 4                      # f32 output
                      + sum(int(a.size) * a.dtype.itemsize for a in args[2:]))
    cost = pl.CostEstimate(flops=flops, transcendentals=b_pad,
                           bytes_accessed=bytes_accessed)

    out = pl.pallas_call(
        mlp_kernel,
        out_shape=jax.ShapeDtypeStruct((1, b_pad), jnp.float32),
        grid=(num_tiles,),
        in_specs=in_specs,
        out_specs=pl.BlockSpec((1, tb), lambda i: (0, i)),  # lane-dense output
        compiler_params=pltpu.CompilerParams(
            dimension_semantics=("parallel",),
            # allow the embedding gather / bf16 cast producers to fuse into the
            # two streamed operands (avoids materializing them twice in HBM)
            allow_input_fusion=[True, True] + [False] * (len(args) - 2),
        ),
        cost_estimate=cost,
    )(*args)

    return out.reshape(-1)[:B]  # matches output.view(-1) in PyTorch


# ----------------------------------------------------------------------------
# Parameter init (matches the PyTorch module's _init_weight semantics).
# Weights are stored in PyTorch (out, in) orientation; biases as (out, 1);
# embedding tables are stored feature-major (emb_dim, num) for column gather.
# ----------------------------------------------------------------------------
def xavier_uniform(key, out_dim, in_dim):
    bound = jnp.sqrt(6.0 / (in_dim + out_dim))
    return jax.random.uniform(key, (out_dim, in_dim), jnp.float32, -bound, bound)


def linear_bias(key, out_dim, in_dim):
    bound = 1.0 / jnp.sqrt(in_dim)
    return jax.random.uniform(key, (out_dim, 1), jnp.float32, -bound, bound)


def init_params(key, num_users, num_items, layer=(64, 32, 16), num_factor=8):
    keys = jax.random.split(key, 12)
    params = {}
    emb_dim = layer[0] // 2
    params["user_embedding"] = 0.01 * jax.random.normal(
        keys[0], (emb_dim, num_users), jnp.float32)
    params["item_embedding"] = 0.01 * jax.random.normal(
        keys[1], (emb_dim, num_items), jnp.float32)
    params["w1"] = xavier_uniform(keys[2], layer[0] // 2, layer[0])
    params["b1"] = linear_bias(keys[3], layer[0] // 2, layer[0])
    params["w2"] = xavier_uniform(keys[4], layer[1] // 2, layer[1])
    params["b2"] = linear_bias(keys[5], layer[1] // 2, layer[1])
    params["w3"] = xavier_uniform(keys[6], layer[2] // 2, layer[2])
    params["b3"] = linear_bias(keys[7], layer[2] // 2, layer[2])
    # predict layer: Linear(num_factor, 1); weight normal std=0.01, stored as (8, 1)
    params["wp"] = 0.01 * jax.random.normal(keys[8], (num_factor, 1), jnp.float32)
    params["bp"] = linear_bias(keys[9], 1, num_factor)
    return params


def model_apply(params, user_idx, item_idx, *, tb=1024):
    # Embedding gather (glue, plain JAX; column gather keeps feature-major layout).
    # TODO(synk): a fully in-kernel gather (scalar-prefetch indices + per-row DMA)
    # is possible but row sizes (128 B) make per-row DMAs slower than XLA's gather.
    eu = jnp.take(params["user_embedding"], user_idx, axis=1)  # (32, B)
    ei = jnp.take(params["item_embedding"], item_idx, axis=1)  # (32, B)
    return mlp_forward(eu, ei, params, tb=tb)


def reference_apply(params, user_idx, item_idx):
    """Pure-JAX (batch-major) reference of the PyTorch forward."""
    eu = jnp.take(params["user_embedding"], user_idx, axis=1).T
    ei = jnp.take(params["item_embedding"], item_idx, axis=1).T
    x = jnp.concatenate([eu, ei], axis=-1)
    h = jnp.maximum(x @ params["w1"].T + params["b1"].T, 0.0)
    h = jnp.maximum(h @ params["w2"].T + params["b2"].T, 0.0)
    h = jnp.maximum(h @ params["w3"].T + params["b3"].T, 0.0)
    logit = h @ params["wp"] + params["bp"]
    return jax.nn.sigmoid(logit).reshape(-1)


if __name__ == "__main__":
    num_users, num_items = 32, 48
    batch = 200          # not a multiple of the tile size -> exercises padding
    tb = 128             # small tile for the test; real workloads use 1024-2048

    key = jax.random.PRNGKey(0)
    kp, ku, ki = jax.random.split(key, 3)
    params = init_params(kp, num_users, num_items)

    user = jax.random.randint(ku, (batch,), 0, num_users, dtype=jnp.int32)
    item = jax.random.randint(ki, (batch,), 0, num_items, dtype=jnp.int32)

    out = model_apply(params, user, item, tb=tb)
    out = jax.block_until_ready(out)

    ref = jax.block_until_ready(reference_apply(params, user, item))

    assert out.shape == (batch,)
    assert bool(jnp.all(jnp.isfinite(out)))
    assert bool(jnp.all((out >= 0.0) & (out <= 1.0)))
    assert bool(jnp.allclose(out, ref, atol=1e-2)), "mismatch vs pure-JAX reference"
    print("KERNEL_OK")
</pallas_src>

<mosaic_0001>
module attributes {stable_mosaic.version = 11 : i64} {
  func.func @mlp_kernel(%arg0: i32, %arg1: memref<32x128xbf16, #tpu.memory_space<vmem>>, %arg2: memref<32x128xbf16, #tpu.memory_space<vmem>>, %arg3: memref<32x32xbf16, #tpu.memory_space<vmem>>, %arg4: memref<32x32xbf16, #tpu.memory_space<vmem>>, %arg5: memref<32x1xf32, #tpu.memory_space<vmem>>, %arg6: memref<16x32xf32, #tpu.memory_space<vmem>>, %arg7: memref<16x1xf32, #tpu.memory_space<vmem>>, %arg8: memref<8x16xf32, #tpu.memory_space<vmem>>, %arg9: memref<8x1xf32, #tpu.memory_space<vmem>>, %arg10: memref<8x1xf32, #tpu.memory_space<vmem>>, %arg11: memref<1x1xf32, #tpu.memory_space<vmem>>, %arg12: memref<1x128xf32, #tpu.memory_space<vmem>>) attributes {dimension_semantics = [#tpu.dimension_semantics<parallel>], iteration_bounds = array<i64: 2>, scalar_prefetch = 0 : i64, scratch_operands = 0 : i64, tpu.core_type = #tpu.core_type<tc>, window_params = [{transform_indices = @transform_0, window_bounds = array<i64: 32, 128>}, {transform_indices = @transform_1, window_bounds = array<i64: 32, 128>}, {pipeline_mode = #tpu.pipeline_mode<synchronous>, transform_indices = @transform_2, window_bounds = array<i64: 32, 32>}, {pipeline_mode = #tpu.pipeline_mode<synchronous>, transform_indices = @transform_3, window_bounds = array<i64: 32, 32>}, {pipeline_mode = #tpu.pipeline_mode<synchronous>, transform_indices = @transform_4, window_bounds = array<i64: 32, 1>}, {pipeline_mode = #tpu.pipeline_mode<synchronous>, transform_indices = @transform_5, window_bounds = array<i64: 16, 32>}, {pipeline_mode = #tpu.pipeline_mode<synchronous>, transform_indices = @transform_6, window_bounds = array<i64: 16, 1>}, {pipeline_mode = #tpu.pipeline_mode<synchronous>, transform_indices = @transform_7, window_bounds = array<i64: 8, 16>}, {pipeline_mode = #tpu.pipeline_mode<synchronous>, transform_indices = @transform_8, window_bounds = array<i64: 8, 1>}, {pipeline_mode = #tpu.pipeline_mode<synchronous>, transform_indices = @transform_9, window_bounds = array<i64: 8, 1>}, {pipeline_mode = #tpu.pipeline_mode<synchronous>, transform_indices = @transform_10, window_bounds = array<i64: 1, 1>}, {transform_indices = @transform_11, window_bounds = array<i64: 1, 128>}]} {
    %c0 = arith.constant 0 : index
    %c0_0 = arith.constant 0 : index
    %0 = vector.load %arg3[%c0, %c0_0] : memref<32x32xbf16, #tpu.memory_space<vmem>>, vector<32x32xbf16>
    %c0_1 = arith.constant 0 : index
    %c0_2 = arith.constant 0 : index
    %1 = vector.load %arg1[%c0_1, %c0_2] : memref<32x128xbf16, #tpu.memory_space<vmem>>, vector<32x128xbf16>
    %cst = arith.constant dense<0.000000e+00> : vector<32x128xf32>
    %2 = tpu.matmul %0, %1, %cst {dimension_numbers = #tpu.dot_dimension_numbers<[1], [0], [0], [1], [0, 0, 1, 1], [], []>} : vector<32x32xbf16>, vector<32x128xbf16>, vector<32x128xf32> -> vector<32x128xf32>
    %c0_3 = arith.constant 0 : index
    %c0_4 = arith.constant 0 : index
    %3 = vector.load %arg4[%c0_3, %c0_4] : memref<32x32xbf16, #tpu.memory_space<vmem>>, vector<32x32xbf16>
    %c0_5 = arith.constant 0 : index
    %c0_6 = arith.constant 0 : index
    %4 = vector.load %arg2[%c0_5, %c0_6] : memref<32x128xbf16, #tpu.memory_space<vmem>>, vector<32x128xbf16>
    %cst_7 = arith.constant dense<0.000000e+00> : vector<32x128xf32>
    %5 = tpu.matmul %3, %4, %cst_7 {dimension_numbers = #tpu.dot_dimension_numbers<[1], [0], [0], [1], [0, 0, 1, 1], [], []>} : vector<32x32xbf16>, vector<32x128xbf16>, vector<32x128xf32> -> vector<32x128xf32>
    %6 = arith.addf %2, %5 : vector<32x128xf32>
    %c0_8 = arith.constant 0 : index
    %c0_9 = arith.constant 0 : index
    %7 = vector.load %arg5[%c0_8, %c0_9] : memref<32x1xf32, #tpu.memory_space<vmem>>, vector<32x1xf32>
    %8 = vector.broadcast %7 : vector<32x1xf32> to vector<32x128xf32>
    %9 = arith.addf %6, %8 : vector<32x128xf32>
    %cst_10 = arith.constant 0.000000e+00 : f32
    %10 = vector.broadcast %cst_10 : f32 to vector<32x128xf32>
    %11 = arith.maximumf %9, %10 : vector<32x128xf32>
    %c0_11 = arith.constant 0 : index
    %c0_12 = arith.constant 0 : index
    %12 = vector.load %arg6[%c0_11, %c0_12] : memref<16x32xf32, #tpu.memory_space<vmem>>, vector<16x32xf32>
    %cst_13 = arith.constant dense<0.000000e+00> : vector<16x128xf32>
    %13 = tpu.matmul %12, %11, %cst_13 {dimension_numbers = #tpu.dot_dimension_numbers<[1], [0], [0], [1], [0, 0, 1, 1], [], []>} : vector<16x32xf32>, vector<32x128xf32>, vector<16x128xf32> -> vector<16x128xf32>
    %c0_14 = arith.constant 0 : index
    %c0_15 = arith.constant 0 : index
    %14 = vector.load %arg7[%c0_14, %c0_15] : memref<16x1xf32, #tpu.memory_space<vmem>>, vector<16x1xf32>
    %15 = vector.broadcast %14 : vector<16x1xf32> to vector<16x128xf32>
    %16 = arith.addf %13, %15 : vector<16x128xf32>
    %cst_16 = arith.constant 0.000000e+00 : f32
    %17 = vector.broadcast %cst_16 : f32 to vector<16x128xf32>
    %18 = arith.maximumf %16, %17 : vector<16x128xf32>
    %c0_17 = arith.constant 0 : index
    %c0_18 = arith.constant 0 : index
    %19 = vector.load %arg8[%c0_17, %c0_18] : memref<8x16xf32, #tpu.memory_space<vmem>>, vector<8x16xf32>
    %cst_19 = arith.constant dense<0.000000e+00> : vector<8x128xf32>
    %20 = tpu.matmul %19, %18, %cst_19 {dimension_numbers = #tpu.dot_dimension_numbers<[1], [0], [0], [1], [0, 0, 1, 1], [], []>} : vector<8x16xf32>, vector<16x128xf32>, vector<8x128xf32> -> vector<8x128xf32>
    %c0_20 = arith.constant 0 : index
    %c0_21 = arith.constant 0 : index
    %21 = vector.load %arg9[%c0_20, %c0_21] : memref<8x1xf32, #tpu.memory_space<vmem>>, vector<8x1xf32>
    %22 = vector.broadcast %21 : vector<8x1xf32> to vector<8x128xf32>
    %23 = arith.addf %20, %22 : vector<8x128xf32>
    %cst_22 = arith.constant 0.000000e+00 : f32
    %24 = vector.broadcast %cst_22 : f32 to vector<8x128xf32>
    %25 = arith.maximumf %23, %24 : vector<8x128xf32>
    %c0_23 = arith.constant 0 : index
    %c0_24 = arith.constant 0 : index
    %26 = vector.load %arg10[%c0_23, %c0_24] : memref<8x1xf32, #tpu.memory_space<vmem>>, vector<8x1xf32>
    %27 = vector.broadcast %26 : vector<8x1xf32> to vector<8x128xf32>
    %28 = arith.mulf %25, %27 : vector<8x128xf32>
    %cst_25 = arith.constant dense<0.000000e+00> : vector<128xf32>
    %29 = vector.multi_reduction <add>, %28, %cst_25 [0] : vector<8x128xf32> to vector<128xf32>
    %30 = vector.shape_cast %29 : vector<128xf32> to vector<1x128xf32>
    %c0_26 = arith.constant 0 : index
    %c0_27 = arith.constant 0 : index
    %31 = vector.load %arg11[%c0_26, %c0_27] : memref<1x1xf32, #tpu.memory_space<vmem>>, vector<1x1xf32>
    %32 = vector.broadcast %31 : vector<1x1xf32> to vector<1x128xf32>
    %33 = arith.addf %30, %32 : vector<1x128xf32>
    %34 = arith.negf %33 : vector<1x128xf32>
    %35 = math.exp %34 : vector<1x128xf32>
    %cst_28 = arith.constant 1.000000e+00 : f32
    %36 = vector.broadcast %cst_28 : f32 to vector<1x128xf32>
    %37 = arith.addf %36, %35 : vector<1x128xf32>
    %38 = arith.divf %36, %37 : vector<1x128xf32>
    %c0_29 = arith.constant 0 : index
    %c0_30 = arith.constant 0 : index
    %39 = vector.load %arg12[%c0_29, %c0_30] : memref<1x128xf32, #tpu.memory_space<vmem>>, vector<1x128xf32>
    tpu.vector_store %arg12[%c0_29, %c0_30], %38 {strides = array<i32>} : memref<1x128xf32, #tpu.memory_space<vmem>>, vector<1x128xf32>,
    return
  }
  func.func @transform_0(%arg0: i32) -> (i32, i32) {
    %c0_i32 = arith.constant 0 : i32
    %c0_i32_0 = arith.constant 0 : i32
    return %c0_i32, %arg0 : i32, i32
  }
  func.func @transform_1(%arg0: i32) -> (i32, i32) {
    %c0_i32 = arith.constant 0 : i32
    %c0_i32_0 = arith.constant 0 : i32
    return %c0_i32, %arg0 : i32, i32
  }
  func.func @transform_2(%arg0: i32) -> (i32, i32) {
    %c0_i32 = arith.constant 0 : i32
    %c0_i32_0 = arith.constant 0 : i32
    %c0_i32_1 = arith.constant 0 : i32
    return %c0_i32, %c0_i32_0 : i32, i32
  }
  func.func @transform_3(%arg0: i32) -> (i32, i32) {
    %c0_i32 = arith.constant 0 : i32
    %c0_i32_0 = arith.constant 0 : i32
    %c0_i32_1 = arith.constant 0 : i32
    return %c0_i32, %c0_i32_0 : i32, i32
  }
  func.func @transform_4(%arg0: i32) -> (i32, i32) {
    %c0_i32 = arith.constant 0 : i32
    %c0_i32_0 = arith.constant 0 : i32
    %c0_i32_1 = arith.constant 0 : i32
    return %c0_i32, %c0_i32_0 : i32, i32
  }
  func.func @transform_5(%arg0: i32) -> (i32, i32) {
    %c0_i32 = arith.constant 0 : i32
    %c0_i32_0 = arith.constant 0 : i32
    %c0_i32_1 = arith.constant 0 : i32
    return %c0_i32, %c0_i32_0 : i32, i32
  }
  func.func @transform_6(%arg0: i32) -> (i32, i32) {
    %c0_i32 = arith.constant 0 : i32
    %c0_i32_0 = arith.constant 0 : i32
    %c0_i32_1 = arith.constant 0 : i32
    return %c0_i32, %c0_i32_0 : i32, i32
  }
  func.func @transform_7(%arg0: i32) -> (i32, i32) {
    %c0_i32 = arith.constant 0 : i32
    %c0_i32_0 = arith.constant 0 : i32
    %c0_i32_1 = arith.constant 0 : i32
    return %c0_i32, %c0_i32_0 : i32, i32
  }
  func.func @transform_8(%arg0: i32) -> (i32, i32) {
    %c0_i32 = arith.constant 0 : i32
    %c0_i32_0 = arith.constant 0 : i32
    %c0_i32_1 = arith.constant 0 : i32
    return %c0_i32, %c0_i32_0 : i32, i32
  }
  func.func @transform_9(%arg0: i32) -> (i32, i32) {
    %c0_i32 = arith.constant 0 : i32
    %c0_i32_0 = arith.constant 0 : i32
    %c0_i32_1 = arith.constant 0 : i32
    return %c0_i32, %c0_i32_0 : i32, i32
  }
  func.func @transform_10(%arg0: i32) -> (i32, i32) {
    %c0_i32 = arith.constant 0 : i32
    %c0_i32_0 = arith.constant 0 : i32
    %c0_i32_1 = arith.constant 0 : i32
    return %c0_i32, %c0_i32_0 : i32, i32
  }
  func.func @transform_11(%arg0: i32) -> (i32, i32) {
    %c0_i32 = arith.constant 0 : i32
    %c0_i32_0 = arith.constant 0 : i32
    return %c0_i32, %arg0 : i32, i32
  }
}

</mosaic_0001>

<bundles_post_ra>
// kernel: tpu_custom_call.1
= control target key start
LH: loop header
LB: loop body
LE: loop exit
PB: predicated region body
PF: predicated region fallthrough
CT: control target
= control target key end

     0   :  { %s1513_s0 = inlined_call_operand.vmem [shape: bf16[32,256], index: 0, kind: input, shape index: {}]   ;;  %s1514_s1 = inlined_call_operand.vmem [shape: bf16[32,256], index: 1, kind: input, shape index: {}]   ;;  %s1515_s2 = inlined_call_operand.hbm [shape: bf16[32,32], index: 2, kind: input, shape index: {}]   ;;  %s1516_s3 = inlined_call_operand.hbm [shape: bf16[32,32], index: 3, kind: input, shape index: {}]   ;;  %s1517_s4 = inlined_call_operand.vmem [shape: f32[32,1], index: 4, kind: input, shape index: {}]   ;;  %s1518_s5 = inlined_call_operand.hbm [shape: f32[16,32], index: 5, kind: input, shape index: {}]   ;;  %s1519_s6 = inlined_call_operand.vmem [shape: f32[16,1], index: 6, kind: input, shape index: {}]   ;;  %s1520_s7 = inlined_call_operand.vmem [shape: f32[8,16], index: 7, kind: input, shape index: {}]   ;;  %s1521_s8 = inlined_call_operand.vmem [shape: f32[8,1], index: 8, kind: input, shape index: {}]   ;;  %s1522_s9 = inlined_call_operand.vmem [shape: f32[8,1], index: 9, kind: input, shape index: {}]   ;;  %s1523_s10 = inlined_call_operand.<no memory space> [shape: f32[1,1], index: 10, kind: input, shape index: {}]   ;;  %s1524_s11 = inlined_call_operand.hbm [shape: f32[1,256], index: 11, kind: output, shape index: {}]  }
   0x1   :  { %1529 = sst [smem:[#allocation19_spill]] %s1515_s2  ;;  %v16_v0 = vstv %s1523_s10 }
   0x2   :  { %1530 = sst [smem:[#allocation20_spill]] %s1516_s3  ;;  %17 = vst [vmem:[#allocation2] sm:$0x1] %v16_v0 }
   0x3   :  { %18 = vsyncpa [#allocation6], 0 }
   0x4   :  { %19 = vsyncpa [#allocation9], 0 }
   0x5   :  { %20 = vsyncpa [#allocation7], 0 }
   0x6   :  { %22 = vsyncpa [#allocation7 + $0x1], 0  ;;  %s1334_s19 = smov 0   ;;  %s1336_s20 = smov 0  }
   0x7   :  { %s1338_s21 = smov 0   ;;  %s1340_s22 = smov 0  }
   0x8 LB: > { %1531 = sst [smem:[#allocation15_spill]] %s1249_s19  ;;  %s1355_s10 = sadd.s32 4294967295, %s1261_s22   ;;  %s1261_s22 = sphi %s1340_s22, %s1544_s22   ;;  %s1257_s21 = sphi %s1338_s21, %s1548_s21   ;;  %s1253_s20 = sphi %s1336_s20, %s1547_s20   ;;  %s1249_s19 = sphi %s1334_s19, %s1546_s19  }
   0x9   : > { %s951_s23 = sadd.s32 4294967294, %s1261_s22   ;;  %s1359_s24 = sadd.s32 1, %s1261_s22  }
   0xa   : > { %1532 = sst [smem:[#allocation16_spill]] %s1359_s24  ;;  %s35_s25 = sadd.s32 1, %s1257_s21 }
   0xb   : > { %s32_s26 = ssub.s32 %s1261_s22, %s1359_s24  ;;  %p42_p0 = scmp.ne.s32.totalorder %s1257_s21, %s1253_s20 }
   0xc   : > { %p33_p1 = scmp.eq.s32.totalorder %s32_s26, 0  ;;  %p43_p2 = scmp.eq.s32.totalorder %s1261_s22, 0 }
   0xd   : > { %p287_p3 = scmp.eq.s32.totalorder %s1355_s10, 1  ;;  %p292_p4 = scmp.ne.s32.totalorder %s1253_s20, %s1249_s19 }
   0xe   : > { %s1371_s27 = scalar_select %p33_p1, %s1257_s21, %s35_s25  }
   0xf   : > { %p1373_p5 = por %p43_p2, %p42_p0  ;;  %p1377_p6 = por %p287_p3, %p42_p0 }
  0x10   : > { %1533 = sst [smem:[#allocation17_spill]] %s1371_s27  ;;  %p293_p7 = scmp.eq.s32.totalorder %s951_s23, 1 }
  0x11   : > { %p952_p8 = scmp.ge.s32.totalorder %s1261_s22, 1  ;;  %p300_p9 = scmp.lt.s32.totalorder %s1261_s22, 3 }
  0x12   : > { %p1383_p10 = por %p293_p7, %p292_p4  ;;  %p1047_p11 = scmp.eq.s32.totalorder %s1355_s10, 0 }
  0x13   : > { %p1388_p12 = pnand %p952_p8, %p300_p9  ;;  %s1539_s3 = sld [smem:[#allocation20_spill]] }
  0x14   : > { %s1536_s30 = scalar_select %p1383_p10, 1, 0 }
  0x15   : > { %p1033_p13 = pneg %p1388_p12  ;;  %s1540_s2 = sld [smem:[#allocation19_spill]] }
  0x16   : > { %1537 = sst [smem:[#allocation18_spill]] %s1536_s30  ;;  %s1263_s25 = smov [#allocation8]  }
  0x17   : > { %p1402_p0 = pnand %p1047_p11, %p1033_p13  ;;  %s327_s26 = sshll.u32 %s1263_s25, 4  ;;  %s328_s26 = int_to_ptr.vmem [resolvable:$true] %s327_s26 }
  0x18   : > { %s1264_s13 = smov 64   ;;  %s1265_s14 = smov 4  }
  0x19   : > { %s325_s15 = sshll.u32 %s1539_s3, 4  ;;  %s1266_s3 = smov [#allocation5]   ;;  %s326_s15 = int_to_ptr.hbm [resolvable:$true] %s325_s15 }
  0x1a   : > { %1039 = dma.hbm_to_vmem [thread:$0]  (!%p1402_p0), %s326_s15, 256, %s328_s26, [#allocation9], %s1264_s13, %s1264_s13, %s1265_s14  }
  0x1b   : > { %s311_s18 = sshll.u32 %s1540_s2, 4  ;;  %s313_s27 = sshll.u32 %s1266_s3, 4  ;;  %s312_s18 = int_to_ptr.hbm [resolvable:$true] %s311_s18  ;;  %s314_s27 = int_to_ptr.vmem [resolvable:$true] %s313_s27 }
  0x1c   : > { %s342_s2 = sshll.u32 %s1518_s5, 4  ;;  %s1267_s24 = smov [#allocation10]   ;;  %s343_s2 = int_to_ptr.hbm [resolvable:$true] %s342_s2 }
  0x1d   : > { %1036 = dma.hbm_to_vmem [thread:$0]  (!%p1402_p0), %s312_s18, 256, %s314_s27, [#allocation6], %s1264_s13, %s1264_s13, %s1265_s14  }
  0x1e   : > { %s344_s30 = sshll.u32 %s1267_s24, 4  ;;  %s1268_s25 = smov 128   ;;  %s345_s30 = int_to_ptr.vmem [resolvable:$true] %s344_s30 }
  0x1f   : > { %s1269_s19 = smov 8   ;;  %p956_p1 = scmp.ge.s32.totalorder %s1261_s22, 2 }
  0x20   : > { %1042 = dma.hbm_to_vmem [thread:$0]  (!%p1402_p0), %s343_s2, 256, %s345_s30, [#allocation9], %s1268_s25, %s1268_s25, %s1269_s19  }
  0x21   : > { %369 = sbr.rel (%p956_p1) target bundleno = 54 (0x36), region = 52 }
  0x26   : > { %372 = sbr.rel (!%p1373_p5) target bundleno = 46 (0x2e), region = 56  ;;  %s374_s3 = sand.u32 (%p1373_p5), 1, %s1257_s21  }
  0x27   : > { %s958_s15 = sshll.u32 (%p1373_p5), %s1261_s22, 2  ;;  %s957_s27 = sshll.u32 (%p1373_p5), %s374_s3, 4 }
  0x28   : > { %s378_s26 = scalar_lea.vmem (%p1373_p5), %s1513_s0, %s958_s15  ;;  %s376_s2 = scalar_lea.vmem (%p1373_p5), [#allocation3], %s957_s27 }
  0x29   : > { %v395_v1 = vld [vmem:[%s378_s26] sm:$0xf] (%p1373_p5)  ;;  %v397_v2 = vld [vmem:[%s378_s26 + $0x8] sm:$0xf] (%p1373_p5)  ;;  %v399_v3 = vld [vmem:[%s378_s26 + $0x10] sm:$0xf] (%p1373_p5) }
  0x2a   : > { %396 = vst [vmem:[%s376_s2] sm:$0xf] (%p1373_p5), %v395_v1  ;;  %v401_v4 = vld [vmem:[%s378_s26 + $0x18] sm:$0xf] (%p1373_p5) }
  0x2b   : > { %398 = vst [vmem:[%s376_s2 + $0x4] sm:$0xf] %v397_v2 }
  0x2c   : > { %400 = vst [vmem:[%s376_s2 + $0x8] sm:$0xf] %v399_v3 }
  0x2d   : > { %402 = vst [vmem:[%s376_s2 + $0xc] sm:$0xf] %v401_v4 }
  0x2e PF: > { %434 = sbr.rel (!%p1373_p5) target bundleno = 54 (0x36), region = 97  ;;  %s436_s19 = sand.u32 (%p1373_p5), 1, %s1257_s21  }
  0x2f   : > { %s960_s30 = sshll.u32 (%p1373_p5), %s1261_s22, 2  ;;  %s959_s23 = sshll.u32 (%p1373_p5), %s436_s19, 4 }
  0x30   : > { %s440_s16 = scalar_lea.vmem (%p1373_p5), %s1514_s1, %s960_s30  ;;  %s438_s17 = scalar_lea.vmem (%p1373_p5), [#allocation4], %s959_s23 }
  0x31   : > { %v457_v5 = vld [vmem:[%s440_s16] sm:$0xf] (%p1373_p5)  ;;  %v459_v6 = vld [vmem:[%s440_s16 + $0x8] sm:$0xf] (%p1373_p5)  ;;  %v461_v7 = vld [vmem:[%s440_s16 + $0x10] sm:$0xf] (%p1373_p5) }
  0x32   : > { %458 = vst [vmem:[%s438_s17] sm:$0xf] (%p1373_p5), %v457_v5  ;;  %v463_v8 = vld [vmem:[%s440_s16 + $0x18] sm:$0xf] (%p1373_p5) }
  0x33   : > { %460 = vst [vmem:[%s438_s17 + $0x4] sm:$0xf] %v459_v6 }
  0x34   : > { %462 = vst [vmem:[%s438_s17 + $0x8] sm:$0xf] %v461_v7 }
  0x35   : > { %464 = vst [vmem:[%s438_s17 + $0xc] sm:$0xf] %v463_v8 }
  0x36 PF: > { %499 = sbr.rel (%p1388_p12) target bundleno = 565 (0x235), region = 138  ;;  %s1435_s28 = sand.u32 (!%p1388_p12), 1, %s1253_s20  }
  0x37   : > { %s962_s25 = sshll.u32 (!%p1388_p12), %s1435_s28, 4 }
  0x38   : > { %s504_s3 = scalar_lea.vmem (!%p1388_p12), [#allocation3], %s962_s25  ;;  %s511_s15 = scalar_lea.vmem (!%p1388_p12), [#allocation4], %s962_s25 }
  0x3b   : > { %1236 = dma.done.wait (%p1047_p11), [#allocation6], 256  }
  0x3c   : > { %1238 = vsyncadd (%p1047_p11), [#allocation6], 4294967040 }
  0x3d   : > { %1240 = dma.done.wait (%p1047_p11), [#allocation9], 512  }
  0x3e   : > { %1242 = vsyncadd (%p1047_p11), [#allocation9], 4294966784  ;;  %v1270_v9 = vmov 0   ;;  %v1016_v10 = vld [vmem:[%s511_s15 + $0x8] sm:$0xff]  ;;  %v1015_v12 = vld [vmem:[%s511_s15] sm:$0xff]  ;;  %vm605_vm0 = vcmask 261120   ;;  %s837_s26 = scalar_lea.hbm %s1524_s11, %s1355_s10 }
  0x3f   : > { %1095 = vset.pattern.permute.xlu1 %v1270_v9  ;;  %1094 = vset.pattern.permute.xlu0 %v1270_v9  ;;  %v1012_v11 = vld [vmem:[%s504_s3 + $0x8] sm:$0xff]  ;;  %v1011_v13 = vld [vmem:[%s504_s3] sm:$0xff]  ;;  %vm762_vm1 = vcmask 130048   ;;  %s565_s2 = scalar_lea.vmem [#allocation11], %s1435_s28  ;;  %s841_s30 = sshll.u32 %s837_s26, 4  ;;  %s842_s30 = int_to_ptr.hbm [resolvable:$true] %s841_s30 }
  0x40   : > { %1096 = vset.pattern.permute.xlu2 %v1270_v9  ;;  %618 = vmatpush.bf16.msra.mxu0 %v1016_v10  ;;  %v679_v14 = vld [vmem:[%s1517_s4 + $0x8] sm:$0xff]  ;;  %v681_v15 = vld [vmem:[%s1517_s4 + $0x18] sm:$0xff]  ;;  %v678_v19 = vld [vmem:[%s1517_s4] sm:$0xff]  ;;  %s839_s19 = sshll.u32 %s565_s2, 4  ;;  %s829_s10 = scalar_lea.sflag [#allocation7], %s1435_s28  ;;  %s840_s19 = int_to_ptr.vmem [resolvable:$true] %s839_s19 }
  0x41   : > { %665 = vmatpush.bf16.msra.mxu1 %v1012_v11  ;;  %1017 = vmatpush.bf16.msra.mxu3 %v1016_v10  ;;  %v1013_v16 = vld [vmem:[#allocation8] sm:$0xff]  ;;  %v1009_v17 = vld [vmem:[#allocation5] sm:$0xff]  ;;  %v1014_v18 = vld [vmem:[#allocation8 + $0x8] sm:$0xff]  ;;  %s1205_s23 = sshra.s32 %s842_s30, 4  ;;  %s1211_s17 = scalar_lea.hbm %s1524_s11, 2  ;;  %s1206_s23 = int_to_ptr.hbm [resolvable:$true] %s1205_s23 }
  0x42   : > { %689 = vperm.xlu1 %1095, %v679_v14   ;;  %699 = vperm.xlu0 %1094, %v681_v15   ;;  %v680_v20 = vld [vmem:[%s1517_s4 + $0x10] sm:$0xff]  ;;  %v787_v21 = vld [vmem:[%s1522_s9] sm:$0xff]  ;;  %v713_v28 = vld [vmem:[%s1519_s6 + $0x8] sm:$0xff]  ;;  %s1207_s13 = scalar_lea.hbm %s1206_s23, 1  ;;  %p1212_p5 = scmp.lt.s32.totalorder %s1206_s23, %s1524_s11 }
  0x43   : > { %v756_v22 = vld [vmem:[%s1521_s8] sm:$0xff]  ;;  %v1010_v23 = vld [vmem:[#allocation5 + $0x8] sm:$0xff]  ;;  %721 = vperm.xlu2 %1096, %v713_v28   ;;  %p1208_p2 = scmp.ne.s32.totalorder %s1206_s23, %s1207_s13  ;;  %p1213_p7 = scmp.lt.s32.totalorder %s1211_s17, %s1207_s13 }
  0x44   : > { %619 = vmatpush.bf16.msra.mxu0 %v1015_v12  ;;  %v712_v32 = vld [vmem:[%s1519_s6] sm:$0xff]  ;;  %v711_v52 = vld [vmem:[#allocation10 + $0x8] sm:$0xff] }
  0x45   : > { %666 = vmatpush.bf16.msra.mxu1 %v1011_v13  ;;  %1018 = vmatpush.bf16.msra.mxu3 %v1015_v12  ;;  %v800_v44 = vld [vmem:[#allocation2] sm:$0x1]  ;;  %v710_v51 = vld [vmem:[#allocation10] sm:$0xff]  ;;  %p1209_p3 = pnand %p1208_p2, %p1377_p6  ;;  %p1214_p8 = por %p1213_p7, %p1212_p5 }
  0x46   : > { %v755_v61 = vld [vmem:[%s1520_s7] sm:$0xff] }
  0x47   : > { %983 = vmatmul.msk.bf16.vlgmr.msra.gmra.mxu0 %vm605_vm0, %v1013_v16  ;;  %p1210_p4 = pneg %p1209_p3 }
  0x48   : > { %1001 = vmatmul.msk.bf16.vlgmr.msra.gmra.mxu1 %vm605_vm0, %v1009_v17  ;;  %984 = vmatmul.msk.bf16.vlgmr.msra.gmra.mxu3 %vm605_vm0, %v1014_v18 }
  0x49   : > { %p1215_p9 = pnand %p1214_p8, %p1210_p4 }
  0x4a   : > { %684 = vperm.xlu1 %1095, %v678_v19   ;;  %694 = vperm.xlu0 %1094, %v680_v20  }
  0x4b   : > { %716 = vperm.xlu2 %1096, %v712_v32  }
  0x52   : > { %790 = vperm.xlu1 %1095, %v787_v21   ;;  %759 = vperm.xlu0 %1094, %v756_v22  }
  0x53   : > { %803 = vperm.xlu2 %1096, %v800_v44  }
  0x58   : > { %1002 = vmatmul.msk.bf16.gmra.mxu1 %vm605_vm0, %v1010_v23 }
  0x9d   : > { %v722_v53 = vpop.permute.xlu2 %721 }
  0xa5   : > { %v717_v55 = vpop.permute.xlu2 %716 }
  0xad   : > { %v804_v8 = vpop.permute.xlu2 %803 }
  0xae   : > { %v806_v10 = vperm.slane %v804_v8, 0 }
  0xb4   : > { %v700_v29 = vpop.permute.xlu0 %699  ;;  %v690_v31 = vpop.permute.xlu1 %689 }
  0xbc   : > { %v695_v39 = vpop.permute.xlu0 %694  ;;  %v685_v43 = vpop.permute.xlu1 %684 }
  0xc4   : > { %v621_v26 = vpop.f32.mrf.mxu0  ;;  %v760_v62 = vpop.permute.xlu0 %759 }
  0xc5   : > { %v668_v24 = vpop.f32.mrf.mxu1  ;;  %v791_v2 = vpop.permute.xlu1 %790 }
  0xc6   : > { %v669_v40 = vadd.f32 %v668_v24, %v621_v26 }
  0xc8   : > { %v702_v47 = vadd.f32 %v685_v43, %v669_v40 }
  0xca   : > { %v706_v50 = vmax.f32 %v702_v47, 0.0 }
  0xcb   : > { %v626_v27 = vpop.f32.mrf.mxu3 }
  0xcc   : > { %v623_v33 = vpop.f32.mrf.mxu0 }
  0xcd   : > { %v670_v25 = vpop.f32.mrf.mxu1 }
  0xce   : > { %v671_v37 = vadd.f32 %v670_v25, %v623_v33 }
  0xd0   : > { %v703_v46 = vadd.f32 %v690_v31, %v671_v37 }
  0xd2   : > { %v707_v49 = vmax.f32 %v703_v46, 0.0 }
  0xd3   : > { %v628_v35 = vpop.f32.mrf.mxu3 }
  0xd5   : > { %v673_v30 = vpop.f32.mrf.mxu1 }
  0xd6   : > { %v674_v34 = vadd.f32 %v673_v30, %v626_v27 }
  0xd8   : > { %v704_v42 = vadd.f32 %v695_v39, %v674_v34 }
  0xda   : > { %v708_v48 = vmax.f32 %v704_v42, 0.0 }
  0xdd   : > { %v675_v36 = vpop.f32.mrf.mxu1 }
  0xde   : > { %v676_v38 = vadd.f32 %v675_v36, %v628_v35 }
  0xe0   : > { %v705_v41 = vadd.f32 %v700_v29, %v676_v38 }
  0xe2   : > { %v709_v45 = vmax.f32 %v705_v41, 0.0 }
  0xe4   : > { %742 = vmatpush.msra.mxu2 %v709_v45 }
  0xe6   : > { %743 = vmatpush.msra.mxu2 %v708_v48 }
  0xe8   : > { %744 = vmatpush.msra.mxu2 %v707_v49 }
  0xea   : > { %745 = vmatpush.msra.mxu2 %v706_v50 }
  0xeb   : > { %1003 = vmatmul.msk.f32.vlgmr.msra.gmra.mxu2 %vm605_vm0, %v710_v51 }
  0xf3   : > { %1004 = vmatmul.msk.f32.gmra.mxu2 %vm605_vm0, %v711_v52 }
 0x16e   : > { %v747_v54 = vpop.f32.mrf.mxu2 }
 0x16f   : > { %v748_v57 = vadd.f32 %v747_v54, %v717_v55 }
 0x171   : > { %v753_v60 = vmax.f32 %v748_v57, 0.0 }
 0x176   : > { %v750_v56 = vpop.f32.mrf.mxu2 }
 0x177   : > { %v751_v58 = vadd.f32 %v750_v56, %v722_v53 }
 0x179   : > { %v754_v59 = vmax.f32 %v751_v58, 0.0 }
 0x17b   : > { %780 = vmatpush.msrb.mxu3 %v754_v59 }
 0x17d   : > { %781 = vmatpush.msrb.mxu3 %v753_v60 }
 0x17e   : > { %1005 = vmatmul.msk.f32.vlgmr.msrb.gmra.mxu3 %vm762_vm1, %v755_v61 }
 0x201   : > { %v783_v63 = vpop.f32.mrf.mxu3 }
 0x202   : > { %v784_v0 = vadd.f32 %v783_v63, %v760_v62 }
 0x204   : > { %v786_v1 = vmax.f32 %v784_v0, 0.0 }
 0x206   : > { %v793_v3 = vmul.f32 %v791_v2, %v786_v1 }
 0x208   : > { %v794_v4 = vrot.slane %v793_v3, 4 }
 0x20a   : > { %v795_v5 = vadd.f32 %v794_v4, %v793_v3 }
 0x20c   : > { %v796_v6 = vrot.slane %v795_v5, 2 }
 0x20e   : > { %v797_v7 = vadd.f32 %v796_v6, %v795_v5 }
 0x210   : > { %v798_v9 = vrot.slane %v797_v7, 1 }
 0x212   : > { %v799_v11 = vadd.f32 %v798_v9, %v797_v7 }
 0x214   : > { %v807_v12 = vadd.f32 %v806_v10, %v799_v11 }
 0x216   : > { %v1006_v13 = vmul.f32 -1.442695, %v807_v12 }
 0x218   : > { %1097 = vpow2.f32 %v1006_v13 }
 0x21e   : > { %v1098_v14 = vpop.eup %1097 }
 0x21f   : > { %v811_v15 = vadd.f32 1.0, %v1098_v14 }
 0x221   : > { %1099 = vrcp.f32 %v811_v15  ;;  %v823_v19 = vand.u32 2147483648, %v811_v15  ;;  %v821_v21 = vand.u32 2147483647, %v811_v15  ;;  %vm817_vm3 = vweird.f32 %v811_v15 }
 0x223   : > { %v824_v23 = vor.u32 1.1754944e-38, %v823_v19  ;;  %vm822_vm5 = vcmp.eq.f32.partialorder %v821_v21, 8.507059e+37 }
 0x227   : > { %v1100_v16 = vpop.eup %1099 }
 0x228   : > { %v813_v17 = vmul.f32 %v1100_v16, %v811_v15  ;;  %vm818_vm2 = vweird.f32 %v1100_v16 }
 0x229   : > { %vm819_vm4 = vmor %vm817_vm3, %vm818_vm2 }
 0x22a   : > { %v814_v18 = vsub.f32 1.0, %v813_v17 }
 0x22c   : > { %v815_v20 = vmul.f32 %v1100_v16, %v814_v18 }
 0x22e   : > { %v816_v22 = vadd.f32 %v1100_v16, %v815_v20 }
 0x230   : > { %v820_v24 = vsel %vm819_vm4, %v1100_v16, %v816_v22 }
 0x231   : > { %v825_v25 = vsel %vm822_vm5, %v824_v23, %v820_v24 }
 0x232   : > { %827 = vst [vmem:[%s565_s2] sm:$0x1] %v825_v25 }
 0x233   : > { %1218 = shalt.err (!%p1215_p9)
}
 0x234   : > { %1031 = dma.vmem_to_hbm [thread:$0]  (%p1377_p6), %s840_s19, 16, %s842_s30, %s829_s10  }
 0x235 PF: > { %s1542_s28 = sld [smem:[#allocation15_spill]]  ;;  %p1044_p11 = pnand %p956_p1, %p1383_p10 }
 0x237   : > { %p1045_p12 = pneg %p1044_p11 }
 0x23b   : > { %s853_s12 = sand.u32 1, %s1542_s28  }
 0x23c   : > { %s854_s27 = scalar_lea.sflag [#allocation7], %s853_s12 }
 0x23d   : > { %1244 = dma.done.wait (%p1045_p12), %s854_s27, 16  }
 0x23e   : > { %1246 = vsyncadd (%p1045_p12), %s854_s27, 4294967280  ;;  %s1544_s22 = sld [smem:[#allocation16_spill]]  ;;  %s1546_s19 = smov %s1253_s20 }
 0x23f   : > { %s1545_s18 = sld [smem:[#allocation17_spill]]  ;;  %s1547_s20 = smov %s1257_s21 }
 0x244   : > { %p25_p13 = scmp.ge.s32.totalorder %s1544_s22, 4  }
 0x245   : > { %s1548_s21 = smov %s1545_s18 }
 0x246   :  { %27 = sbr.rel (!%p25_p13) target bundleno = 8 (0x8), region = 207 }
 0x24b   :  { %859 = vsyncpa [#allocation6], 1 }
 0x24c   :  { %861 = vsyncpa [#allocation6 + $0x1], 1 }
 0x24d   :  { %862 = vsyncpa [#allocation9], 1 }
 0x24e   :  { %863 = vsyncpa [#allocation7], 1 }
 0x24f   :  { %865 = vsyncpa [#allocation7 + $0x1], 1 }

</bundles_post_ra>
